<compile_context>
chip_gen: v7x
topology: tpu7x:2x2x1
jax: 0.10.0
libtpu: 0.0.40
codegen_flags: <defaults>
</compile_context>

<pallas_src>
import numpy as np
import jax
import jax.numpy as jnp
from jax.experimental import pallas as pl
from jax.experimental.pallas import tpu as pltpu

d_k = d_v = 32
_SCALE = 1.0 / float(np.sqrt(d_k))
_LANE = 128
_MASK_FILL = -1.0e9                           # torch masked_fill_ value
_NEG_PAD = float(np.finfo(np.float32).min)    # fence for lane-padding columns


def _round_up(x, m):
    return ((x + m - 1) // m) * m


def _min_sublane(itemsize):
    # minimum second-minor tile: f32 -> 8, bf16 -> 16, int8 -> 32 sublanes
    return max(8, 32 // max(int(itemsize), 1))


def _generation_params():
    """Returns (per-step VMEM budget, vmem_limit_bytes, multi-TensorCore hint)."""
    vmem = None
    try:
        vmem = int(pltpu.get_tpu_info().vmem_capacity_bytes)
    except Exception:
        vmem = None
    if vmem is not None and vmem >= (96 << 20):
        # v5e / v6e: 128 MiB physical VMEM, one TensorCore per chip.
        return 56 << 20, 112 << 20, False
    # v7x (64 MiB per TensorCore, 2 TCs/chip) -- also the conservative fallback.
    return 36 << 20, 56 << 20, True


def _per_step_vmem(G, Sq, Sk_pad, Dk, Dv, in_bytes, out_bytes, has_mask):
    """Layout-aware per-grid-step VMEM footprint: lane dim padded to 128,
    sublane dim padded to the dtype's min tile, 2x for double buffering."""
    sub_in = _min_sublane(in_bytes)
    sub_out = _min_sublane(out_bytes)
    sq_in = _round_up(Sq, sub_in)
    sk_in = _round_up(Sk_pad, sub_in)
    dk_l = _round_up(Dk, _LANE)
    dv_l = _round_up(Dv, _LANE)
    sk_l = _round_up(Sk_pad, _LANE)
    total = 0
    total += 2 * G * sq_in * dk_l * in_bytes                                  # Q
    total += 2 * G * sk_in * dk_l * in_bytes                                  # K
    total += 2 * G * sk_in * dv_l * in_bytes                                  # V
    if has_mask:
        total += 2 * G * _round_up(Sq, 32) * sk_l                             # int8 mask
    total += 2 * G * _round_up(Sq, sub_out) * sk_l * out_bytes                # attn out
    total += 2 * _round_up(Sq, sub_out) * _round_up(G * Dv, _LANE) * out_bytes  # ctx out
    total += 3 * G * _round_up(Sq, 8) * sk_l * 4                              # scores/exps/p (f32)
    total += 2 * G * _round_up(Sq, 8) * dv_l * 4                              # ctx accum (f32)
    return total


def _pick_group(BH, Sq, Sk_pad, Dk, Dv, in_bytes, out_bytes, has_mask,
                budget_bytes, prefer_multi_core, cap=256):
    """Largest divisor of BH whose padded per-step footprint fits the budget."""
    divisors = [g for g in range(1, min(BH, cap) + 1) if BH % g == 0]
    fits = [g for g in divisors
            if _per_step_vmem(g, Sq, Sk_pad, Dk, Dv, in_bytes, out_bytes,
                              has_mask) <= budget_bytes]
    if not fits:
        fits = [1]
    if prefer_multi_core:
        # keep the "parallel" grid axis even (>= 2 steps) so both v7x
        # TensorCores get work; irrelevant on single-TC v5e/v6e.
        mc = [g for g in fits if (BH // g) >= 2 and (BH // g) % 2 == 0]
        if mc:
            fits = mc
    return max(fits)


def _make_sdpa_kernel(G, Dv, Sk_real, Sk_pad, has_mask):
    def body(q, k, v, mask, ctx_ref, attn_ref):
        # Fold 1/sqrt(d_k) into Q: Sq*Dk multiplies instead of Sq*Sk.
        # (Applied in Q's dtype; for bf16 inputs this deviates from torch's
        #  f32 score scaling by < the test tolerance.)
        qs = q * jnp.asarray(_SCALE, dtype=q.dtype)

        # scores = (Q/sqrt(d_k)) @ K^T: contract the last dim of both operands
        # (MXU-friendly, no K transpose), accumulate in f32.
        scores = jnp.einsum("gqd,gkd->gqk", qs, k,
                            preferred_element_type=jnp.float32)  # [G,Sq,Sk_pad]

        # masked_fill_(attn_mask, -1e9)
        if has_mask:
            scores = jnp.where(mask != 0, jnp.float32(_MASK_FILL), scores)

        if Sk_pad != Sk_real:
            # Fence off lane-padding columns with a value far below -1e9 so a
            # fully-masked real row still softmaxes to 1/Sk_real (torch
            # semantics) while padded columns get exactly-zero probability.
            col = jax.lax.broadcasted_iota(jnp.int32, scores.shape, 2)
            scores = jnp.where(col >= Sk_real, jnp.float32(_NEG_PAD), scores)

        # numerically stable softmax over the last axis
        row_max = jnp.max(scores, axis=-1, keepdims=True)
        exps = jnp.exp(scores - row_max)
        denom = jnp.sum(exps, axis=-1, keepdims=True)
        # exact reciprocal keeps the 1e-4 parity with the reference.
        # TODO(synk): approx=True (pure EUP slot) if ~1e-3 accuracy is OK.
        inv = pl.reciprocal(denom, approx=False)                 # [G,Sq,1] f32

        # Feed UNNORMALIZED exps to the MXU; normalize on the small ctx path
        # (Sq*Dv mults) -> one fewer live f32 [G,Sq,Sk] array before the MXU.
        ctx = jnp.einsum("gqk,gkd->gqd", exps.astype(v.dtype), v,
                         preferred_element_type=jnp.float32)     # [G,Sq,Dv]
        ctx = (ctx * inv).astype(ctx_ref.dtype)

        attn_ref[...] = (exps * inv).astype(attn_ref.dtype)

        # Lane-dense ctx store: fold the G heads into the lane dim so the
        # (1, Sq, G*Dv) output block DMAs as full-width rows instead of
        # 32/128-lane masked stores.
        for g in range(G):
            ctx_ref[0, :, g * Dv:(g + 1) * Dv] = ctx[g]

    if has_mask:
        def kernel(q_ref, k_ref, v_ref, mask_ref, ctx_ref, attn_ref):
            body(q_ref[...], k_ref[...], v_ref[...], mask_ref[...],
                 ctx_ref, attn_ref)
    else:
        def kernel(q_ref, k_ref, v_ref, ctx_ref, attn_ref):
            body(q_ref[...], k_ref[...], v_ref[...], None, ctx_ref, attn_ref)
    return kernel


def scaled_dot_product_attention(Q, K, V, attn_mask=None):
    """Q: [B, H, Sq, d_k], K: [B, H, Sk, d_k], V: [B, H, Sk, d_v],
    attn_mask: bool [B, H, Sq, Sk] (True == masked) or None.
    Returns (context [B,H,Sq,d_v], attn [B,H,Sq,Sk])."""
    B, H, Sq, Dk = Q.shape
    Sk = K.shape[2]
    Dv = V.shape[3]
    BH = B * H

    q = Q.reshape(BH, Sq, Dk)
    k = K.reshape(BH, Sk, Dk)
    v = V.reshape(BH, Sk, Dv)

    # Lane-dense attn writeback + aligned MXU N dim: pad the key axis to a
    # multiple of 128.  Padded columns are fenced in-kernel and sliced away.
    Sk_pad = _round_up(Sk, _LANE)
    if Sk_pad != Sk:
        pad = Sk_pad - Sk
        k = jnp.pad(k, ((0, 0), (0, pad), (0, 0)))
        v = jnp.pad(v, ((0, 0), (0, pad), (0, 0)))

    has_mask = attn_mask is not None
    out_dtype = Q.dtype
    in_bytes = jnp.dtype(Q.dtype).itemsize
    out_bytes = jnp.dtype(out_dtype).itemsize

    budget, vmem_limit, multi_core = _generation_params()
    G = _pick_group(BH, Sq, Sk_pad, Dk, Dv, in_bytes, out_bytes, has_mask,
                    budget, multi_core)
    NB = BH // G

    kernel = _make_sdpa_kernel(G, Dv, Sk, Sk_pad, has_mask)

    out_shape = (
        jax.ShapeDtypeStruct((NB, Sq, G * Dv), out_dtype),   # heads folded into lanes
        jax.ShapeDtypeStruct((BH, Sq, Sk_pad), out_dtype),
    )
    out_specs = [
        pl.BlockSpec((1, Sq, G * Dv), lambda i: (i, 0, 0)),
        pl.BlockSpec((G, Sq, Sk_pad), lambda i: (i, 0, 0)),
    ]
    in_specs = [
        pl.BlockSpec((G, Sq, Dk), lambda i: (i, 0, 0)),
        pl.BlockSpec((G, Sk_pad, Dk), lambda i: (i, 0, 0)),
        pl.BlockSpec((G, Sk_pad, Dv), lambda i: (i, 0, 0)),
    ]
    args = [q, k, v]
    if has_mask:
        m = jnp.broadcast_to(attn_mask, (B, H, Sq, Sk)).reshape(BH, Sq, Sk)
        m = m.astype(jnp.int8)
        if Sk_pad != Sk:
            m = jnp.pad(m, ((0, 0), (0, 0), (0, Sk_pad - Sk)))
        in_specs.append(pl.BlockSpec((G, Sq, Sk_pad), lambda i: (i, 0, 0)))
        args.append(m)

    ctx_folded, attn_p = pl.pallas_call(
        kernel,
        out_shape=out_shape,
        grid_spec=pltpu.PrefetchScalarGridSpec(
            num_scalar_prefetch=0,
            grid=(NB,),
            in_specs=in_specs,
            out_specs=out_specs,
        ),
        compiler_params=pltpu.CompilerParams(
            dimension_semantics=("parallel",),
            vmem_limit_bytes=vmem_limit,
        ),
    )(*args)

    # un-plumb the lane-folded ctx: lane g*Dv+d of step i is head i*G+g.
    ctx = (ctx_folded.reshape(NB, Sq, G, Dv)
           .transpose(0, 2, 1, 3)
           .reshape(B, H, Sq, Dv))
    attn = attn_p[:, :, :Sk].reshape(B, H, Sq, Sk)
    return ctx, attn


def _reference(Q, K, V, attn_mask):
    scores = jnp.matmul(Q, jnp.swapaxes(K, -1, -2)) / np.sqrt(d_k)
    if attn_mask is not None:
        scores = jnp.where(attn_mask, _MASK_FILL, scores)
    attn = jax.nn.softmax(scores, axis=-1)
    context = jnp.matmul(attn, V)
    return context, attn


if __name__ == "__main__":
    key = jax.random.PRNGKey(0)
    kq, kk, kv, km = jax.random.split(key, 4)

    B, H, S = 2, 2, 8
    Q = jax.random.normal(kq, (B, H, S, d_k), dtype=jnp.float32)
    K = jax.random.normal(kk, (B, H, S, d_k), dtype=jnp.float32)
    V = jax.random.normal(kv, (B, H, S, d_v), dtype=jnp.float32)
    # deterministic boolean mask (True == masked position)
    attn_mask = jax.random.bernoulli(km, 0.25, (B, H, S, S))

    # masked path
    ctx, attn = scaled_dot_product_attention(Q, K, V, attn_mask)
    jax.block_until_ready((ctx, attn))
    ctx_ref, attn_ref = _reference(Q, K, V, attn_mask)
    np.testing.assert_allclose(np.asarray(ctx), np.asarray(ctx_ref),
                               rtol=1e-4, atol=1e-4)
    np.testing.assert_allclose(np.asarray(attn), np.asarray(attn_ref),
                               rtol=1e-4, atol=1e-4)

    # mask=None path (separate kernel, no mask DMA at all)
    ctx_n, attn_n = scaled_dot_product_attention(Q, K, V, None)
    jax.block_until_ready((ctx_n, attn_n))
    ctx_ref_n, attn_ref_n = _reference(Q, K, V, None)
    np.testing.assert_allclose(np.asarray(ctx_n), np.asarray(ctx_ref_n),
                               rtol=1e-4, atol=1e-4)
    np.testing.assert_allclose(np.asarray(attn_n), np.asarray(attn_ref_n),
                               rtol=1e-4, atol=1e-4)

    print("KERNEL_OK")
</pallas_src>

<mosaic_0001>
module attributes {stable_mosaic.version = 11 : i64} {
  func.func @kernel(%arg0: i32, %arg1: memref<2x8x32xf32, #tpu.memory_space<vmem>>, %arg2: memref<2x128x32xf32, #tpu.memory_space<vmem>>, %arg3: memref<2x128x32xf32, #tpu.memory_space<vmem>>, %arg4: memref<2x8x128xi8, #tpu.memory_space<vmem>>, %arg5: memref<1x8x64xf32, #tpu.memory_space<vmem>>, %arg6: memref<2x8x128xf32, #tpu.memory_space<vmem>>) attributes {dimension_semantics = [#tpu.dimension_semantics<parallel>], iteration_bounds = array<i64: 2>, scalar_prefetch = 0 : i64, scratch_operands = 0 : i64, tpu.core_type = #tpu.core_type<tc>, window_params = [{transform_indices = @transform_0, window_bounds = array<i64: 2, 8, 32>}, {transform_indices = @transform_1, window_bounds = array<i64: 2, 128, 32>}, {transform_indices = @transform_2, window_bounds = array<i64: 2, 128, 32>}, {transform_indices = @transform_3, window_bounds = array<i64: 2, 8, 128>}, {transform_indices = @transform_4, window_bounds = array<i64: 1, 8, 64>}, {transform_indices = @transform_5, window_bounds = array<i64: 2, 8, 128>}]} {
    %c0 = arith.constant 0 : index
    %c0_0 = arith.constant 0 : index
    %c0_1 = arith.constant 0 : index
    %0 = vector.load %arg1[%c0, %c0_0, %c0_1] : memref<2x8x32xf32, #tpu.memory_space<vmem>>, vector<2x8x32xf32>
    %c0_2 = arith.constant 0 : index
    %c0_3 = arith.constant 0 : index
    %c0_4 = arith.constant 0 : index
    %1 = vector.load %arg2[%c0_2, %c0_3, %c0_4] : memref<2x128x32xf32, #tpu.memory_space<vmem>>, vector<2x128x32xf32>
    %c0_5 = arith.constant 0 : index
    %c0_6 = arith.constant 0 : index
    %c0_7 = arith.constant 0 : index
    %2 = vector.load %arg3[%c0_5, %c0_6, %c0_7] : memref<2x128x32xf32, #tpu.memory_space<vmem>>, vector<2x128x32xf32>
    %c0_8 = arith.constant 0 : index
    %c0_9 = arith.constant 0 : index
    %c0_10 = arith.constant 0 : index
    %3 = vector.load %arg4[%c0_8, %c0_9, %c0_10] : memref<2x8x128xi8, #tpu.memory_space<vmem>>, vector<2x8x128xi8>
    %cst = arith.constant 0.176776692 : f32
    %4 = vector.broadcast %cst : f32 to vector<2x8x32xf32>
    %5 = arith.mulf %0, %4 : vector<2x8x32xf32>
    "tpu.trace_start"() <{level = 10 : i32, message = "gqd,gkd->gqk"}> : () -> ()
    %cst_11 = arith.constant dense<0.000000e+00> : vector<2x8x128xf32>
    %6 = tpu.matmul %5, %1, %cst_11 {dimension_numbers = #tpu.dot_dimension_numbers<[2], [2], [1], [1], [0, 0, 0, 1, 1, 1], [0], [0]>} : vector<2x8x32xf32>, vector<2x128x32xf32>, vector<2x8x128xf32> -> vector<2x8x128xf32>
    %c0_i8 = arith.constant 0 : i8
    "tpu.trace_stop"() : () -> ()
    %7 = vector.broadcast %c0_i8 : i8 to vector<2x8x128xi8>
    %8 = arith.cmpi ne, %3, %7 : vector<2x8x128xi8>
    %cst_12 = arith.constant -1.000000e+09 : f32
    %9 = vector.broadcast %cst_12 : f32 to vector<2x8x128xf32>
    %10 = arith.select %8, %9, %6 : vector<2x8x128xi1>, vector<2x8x128xf32>
    %11 = tpu.iota {dimensions = array<i32: 2>} : vector<2x8x128xi32>
    %c8_i32 = arith.constant 8 : i32
    %12 = vector.broadcast %c8_i32 : i32 to vector<2x8x128xi32>
    %13 = arith.cmpi sge, %11, %12 : vector<2x8x128xi32>
    %cst_13 = arith.constant -3.40282347E+38 : f32
    %14 = vector.broadcast %cst_13 : f32 to vector<2x8x128xf32>
    %15 = arith.select %13, %14, %10 : vector<2x8x128xi1>, vector<2x8x128xf32>
    %cst_14 = arith.constant dense<0xFF800000> : vector<2x8xf32>
    %16 = vector.multi_reduction <maximumf>, %15, %cst_14 [2] : vector<2x8x128xf32> to vector<2x8xf32>
    %17 = vector.shape_cast %16 : vector<2x8xf32> to vector<2x8x1xf32>
    %18 = vector.broadcast %17 : vector<2x8x1xf32> to vector<2x8x128xf32>
    %19 = arith.subf %15, %18 : vector<2x8x128xf32>
    %20 = math.exp %19 : vector<2x8x128xf32>
    %cst_15 = arith.constant dense<0.000000e+00> : vector<2x8xf32>
    %21 = vector.multi_reduction <add>, %20, %cst_15 [2] : vector<2x8x128xf32> to vector<2x8xf32>
    %22 = vector.shape_cast %21 : vector<2x8xf32> to vector<2x8x1xf32>
    %23 = tpu.reciprocal %22 : vector<2x8x1xf32> -> vector<2x8x1xf32>
    "tpu.trace_start"() <{level = 10 : i32, message = "gqk,gkd->gqd"}> : () -> ()
    %cst_16 = arith.constant dense<0.000000e+00> : vector<2x8x32xf32>
    %24 = tpu.matmul %20, %2, %cst_16 {dimension_numbers = #tpu.dot_dimension_numbers<[2], [1], [1], [2], [0, 0, 0, 1, 1, 2], [0], [0]>} : vector<2x8x128xf32>, vector<2x128x32xf32>, vector<2x8x32xf32> -> vector<2x8x32xf32>
    "tpu.trace_stop"() : () -> ()
    %25 = vector.broadcast %23 : vector<2x8x1xf32> to vector<2x8x32xf32>
    %26 = arith.mulf %24, %25 : vector<2x8x32xf32>
    %27 = vector.broadcast %23 : vector<2x8x1xf32> to vector<2x8x128xf32>
    %28 = arith.mulf %20, %27 : vector<2x8x128xf32>
    %c0_17 = arith.constant 0 : index
    %c0_18 = arith.constant 0 : index
    %c0_19 = arith.constant 0 : index
    %29 = vector.load %arg6[%c0_17, %c0_18, %c0_19] : memref<2x8x128xf32, #tpu.memory_space<vmem>>, vector<2x8x128xf32>
    tpu.vector_store %arg6[%c0_17, %c0_18, %c0_19], %28 {strides = array<i32>} : memref<2x8x128xf32, #tpu.memory_space<vmem>>, vector<2x8x128xf32>,
    %30 = vector.extract_strided_slice %26 {offsets = [0, 0, 0], sizes = [1, 8, 32], strides = [1, 1, 1]} : vector<2x8x32xf32> to vector<1x8x32xf32>
    %31 = vector.shape_cast %30 : vector<1x8x32xf32> to vector<8x32xf32>
    %c0_20 = arith.constant 0 : index
    %c0_21 = arith.constant 0 : index
    %c0_22 = arith.constant 0 : index
    %32 = vector.load %arg5[%c0_20, %c0_21, %c0_22] : memref<1x8x64xf32, #tpu.memory_space<vmem>>, vector<1x8x32xf32>
    %33 = vector.shape_cast %32 : vector<1x8x32xf32> to vector<8x32xf32>
    %34 = vector.shape_cast %31 : vector<8x32xf32> to vector<1x8x32xf32>
    tpu.vector_store %arg5[%c0_20, %c0_21, %c0_22], %34 {strides = array<i32>} : memref<1x8x64xf32, #tpu.memory_space<vmem>>, vector<1x8x32xf32>,
    %35 = vector.extract_strided_slice %26 {offsets = [1, 0, 0], sizes = [1, 8, 32], strides = [1, 1, 1]} : vector<2x8x32xf32> to vector<1x8x32xf32>
    %36 = vector.shape_cast %35 : vector<1x8x32xf32> to vector<8x32xf32>
    %c0_23 = arith.constant 0 : index
    %c0_24 = arith.constant 0 : index
    %c32 = arith.constant 32 : index
    %37 = vector.load %arg5[%c0_23, %c0_24, %c32] : memref<1x8x64xf32, #tpu.memory_space<vmem>>, vector<1x8x32xf32>
    %38 = vector.shape_cast %37 : vector<1x8x32xf32> to vector<8x32xf32>
    %39 = vector.shape_cast %36 : vector<8x32xf32> to vector<1x8x32xf32>
    tpu.vector_store %arg5[%c0_23, %c0_24, %c32], %39 {strides = array<i32>} : memref<1x8x64xf32, #tpu.memory_space<vmem>>, vector<1x8x32xf32>,
    return
  }
  func.func @transform_0(%arg0: i32) -> (i32, i32, i32) {
    %c0_i32 = arith.constant 0 : i32
    %c0_i32_0 = arith.constant 0 : i32
    %c0_i32_1 = arith.constant 0 : i32
    return %arg0, %c0_i32, %c0_i32_0 : i32, i32, i32
  }
  func.func @transform_1(%arg0: i32) -> (i32, i32, i32) {
    %c0_i32 = arith.constant 0 : i32
    %c0_i32_0 = arith.constant 0 : i32
    %c0_i32_1 = arith.constant 0 : i32
    return %arg0, %c0_i32, %c0_i32_0 : i32, i32, i32
  }
  func.func @transform_2(%arg0: i32) -> (i32, i32, i32) {
    %c0_i32 = arith.constant 0 : i32
    %c0_i32_0 = arith.constant 0 : i32
    %c0_i32_1 = arith.constant 0 : i32
    return %arg0, %c0_i32, %c0_i32_0 : i32, i32, i32
  }
  func.func @transform_3(%arg0: i32) -> (i32, i32, i32) {
    %c0_i32 = arith.constant 0 : i32
    %c0_i32_0 = arith.constant 0 : i32
    %c0_i32_1 = arith.constant 0 : i32
    return %arg0, %c0_i32, %c0_i32_0 : i32, i32, i32
  }
  func.func @transform_4(%arg0: i32) -> (i32, i32, i32) {
    %c0_i32 = arith.constant 0 : i32
    %c0_i32_0 = arith.constant 0 : i32
    %c0_i32_1 = arith.constant 0 : i32
    return %arg0, %c0_i32, %c0_i32_0 : i32, i32, i32
  }
  func.func @transform_5(%arg0: i32) -> (i32, i32, i32) {
    %c0_i32 = arith.constant 0 : i32
    %c0_i32_0 = arith.constant 0 : i32
    %c0_i32_1 = arith.constant 0 : i32
    return %arg0, %c0_i32, %c0_i32_0 : i32, i32, i32
  }
}

</mosaic_0001>

<bundles_post_ra>
// kernel: tpu_custom_call.1
= control target key start
LH: loop header
LB: loop body
LE: loop exit
PB: predicated region body
PF: predicated region fallthrough
CT: control target
= control target key end

     0   :  { %11 = vsyncpa [#allocation3], 0  ;;  %s1847_s0 = inlined_call_operand.vmem [shape: f32[4,8,32], index: 0, kind: input, shape index: {}]   ;;  %s1848_s1 = inlined_call_operand.vmem [shape: f32[4,128,32], index: 1, kind: input, shape index: {}]   ;;  %s1849_s2 = inlined_call_operand.vmem [shape: f32[4,128,32], index: 2, kind: input, shape index: {}]   ;;  %s1850_s3 = inlined_call_operand.vmem [shape: s8[4,8,128], index: 3, kind: input, shape index: {}]   ;;  %s1851_s4 = inlined_call_operand.hbm [shape: f32[2,8,64], index: 4, kind: output, shape index: {0}]   ;;  %s1852_s5 = inlined_call_operand.hbm [shape: f32[4,8,128], index: 5, kind: output, shape index: {1}]  }
   0x1   :  { %13 = vsyncpa [#allocation3 + $0x1], 0 }
   0x2   :  { %14 = vsyncpa [#allocation5], 0 }
   0x3   :  { %16 = vsyncpa [#allocation5 + $0x1], 0  ;;  %s1544_s18 = smov 0   ;;  %s1546_s19 = smov 0  }
   0x4   :  { %s1548_s20 = smov 0   ;;  %s1550_s21 = smov 0  }
   0x5 LB: > { %s1565_s22 = sadd.s32 4294967295, %s1503_s21   ;;  %s970_s23 = sadd.s32 4294967294, %s1503_s21   ;;  %s1503_s21 = sphi %s1550_s21, %s1860_s21   ;;  %s1499_s20 = sphi %s1548_s20, %s1859_s20   ;;  %s1495_s19 = sphi %s1546_s19, %s1858_s19   ;;  %s1491_s18 = sphi %s1544_s18, %s1857_s18  }
   0x6   : > { %s1569_s24 = sadd.s32 1, %s1503_s21   ;;  %s133_s25 = sadd.s32 1, %s1499_s20 }
   0x7   : > { %s130_s26 = ssub.s32 %s1503_s21, %s1569_s24  ;;  %p143_p0 = scmp.ne.s32.totalorder %s1499_s20, %s1495_s19 }
   0x8   : > { %p131_p1 = scmp.eq.s32.totalorder %s130_s26, 0  ;;  %p144_p2 = scmp.eq.s32.totalorder %s1565_s22, 1 }
   0x9   : > { %p149_p3 = scmp.ne.s32.totalorder %s1495_s19, %s1491_s18  ;;  %p150_p4 = scmp.eq.s32.totalorder %s970_s23, 1 }
   0xa   : > { %s1580_s27 = scalar_select %p131_p1, %s1499_s20, %s133_s25  }
   0xb   : > { %p1582_p5 = por %p144_p2, %p143_p0  ;;  %p1586_p6 = por %p150_p4, %p149_p3 }
   0xc   : > { %p973_p7 = scmp.ge.s32.totalorder %s1503_s21, 1  ;;  %p232_p8 = scmp.lt.s32.totalorder %s1503_s21, 3 }
   0xe   : > { %p233_p9 = pnand %p973_p7, %p232_p8 }
   0xf   : > { %s976_s30 = sshll.u32 (!%p233_p9), %s1565_s22, 1  ;;  %v1505_v0 = vmov (!%p233_p9), 0.0|0.0   ;;  %vm1506_vm0 = vmmov (!%p233_p9), 0   ;;  %v1507_v1 = vmov (!%p233_p9), 0.0   ;;  %vm381_vm1 = vcmask (!%p233_p9), 261120   ;;  %s1029_s8 = sshll.u32 (!%p233_p9), %s1565_s22, 8 }
  0x10   : > { %236 = sbr.rel (%p233_p9) target bundleno = 806 (0x326), region = 36  ;;  %1270 = vmatprep.subr.bf16.mxu1 (!%p233_p9), %v1505_v0  ;;  %p283_p10 = scmp.lt.s32.totalorder (!%p233_p9), %s976_s30, 3  ;;  %1238 = vmatprep.subr.bf16.mxu0 (!%p233_p9), %v1505_v0  ;;  %vm1611_vm2 = vmpackc.low (!%p233_p9), %vm381_vm1, %vm381_vm1 }
  0x11   : > { %1165 = vmatprep.mubr.msk.f32.mxu1 (!%p233_p9), %vm1506_vm0, %v1507_v1  ;;  %1130 = vmatprep.mubr.msk.f32.mxu0 (!%p233_p9), %vm1506_vm0, %v1507_v1  ;;  %s1770_s12 = scalar_lea.hbm (!%p233_p9), %s1852_s5, %s1029_s8  ;;  %s1509_s15 = smov (!%p233_p9), [#allocation4]  }
  0x17   : > { %s1862_s30 = smov (!%p283_p10, %s976_s30), 3 }
  0x18   : > { %s1027_s6 = sshll.u32 %s1862_s30, 7  ;;  %s977_s10 = sshll.u32 %s1862_s30, 3 }
  0x19   : > { %s1607_s9 = scalar_lea.vmem %s1848_s1, %s1027_s6  ;;  %s286_s13 = scalar_lea.vmem %s1847_s0, %s977_s10 }
  0x1a   : > { %v329_v3 = vld [vmem:[%s1607_s9 + $0x80] sm:$0xff]  ;;  %v330_v4 = vld [vmem:[%s1607_s9 + $0x88] sm:$0xff]  ;;  %v331_v9 = vld [vmem:[%s1607_s9 + $0x90] sm:$0xff]  ;;  %s1710_s16 = scalar_lea.vmem %s1849_s2, %s1027_s6  ;;  %s985_s17 = sshll.u32 %s1862_s30, 1 }
  0x1b   : > { %v313_v5 = vld [vmem:[%s1607_s9] sm:$0xff]  ;;  %v1271_v6 = vpack.c.bf16 %v330_v4, %v329_v3  ;;  %v314_v7 = vld [vmem:[%s1607_s9 + $0x8] sm:$0xff]  ;;  %v332_v10 = vld [vmem:[%s1607_s9 + $0x98] sm:$0xff]  ;;  %s306_s26 = scalar_lea.vmem %s1850_s3, %s985_s17  ;;  %s1763_s30 = sand.u32 1, %s1495_s19  }
  0x1c   : > { %v1239_v8 = vpack.c.bf16 %v314_v7, %v313_v5  ;;  %v315_v11 = vld [vmem:[%s1607_s9 + $0x10] sm:$0xff]  ;;  %v316_v12 = vld [vmem:[%s1607_s9 + $0x18] sm:$0xff]  ;;  %v1275_v13 = vpack.c.bf16 %v332_v10, %v331_v9  ;;  %v333_v15 = vld [vmem:[%s1607_s9 + $0xa0] sm:$0xff]  ;;  %s975_s6 = sshll.u32 %s1763_s30, 4 }
  0x1d   : > { %1273 = vmatpush3.bf16.xpose.msk.msra.mxu1 %vm1611_vm2, %v1271_v6  ;;  %v1243_v14 = vpack.c.bf16 %v316_v12, %v315_v11  ;;  %v334_v16 = vld [vmem:[%s1607_s9 + $0xa8] sm:$0xff]  ;;  %v317_v17 = vld [vmem:[%s1607_s9 + $0x20] sm:$0xff]  ;;  %v335_v21 = vld [vmem:[%s1607_s9 + $0xb0] sm:$0xff]  ;;  %s281_s7 = scalar_lea.vmem [#allocation4], %s975_s6 }
  0x1e   : > { %1241 = vmatpush3.bf16.xpose.msk.msra.mxu0 %vm1611_vm2, %v1239_v8  ;;  %1274 = vmatprep.subr.bf16.mxu1 %v1505_v0  ;;  %v318_v18 = vld [vmem:[%s1607_s9 + $0x28] sm:$0xff]  ;;  %v1279_v19 = vpack.c.bf16 %v334_v16, %v333_v15  ;;  %v336_v22 = vld [vmem:[%s1607_s9 + $0xb8] sm:$0xff]  ;;  %v319_v23 = vld [vmem:[%s1607_s9 + $0x30] sm:$0xff]  ;;  %v1508_v15 = vmov 0  }
  0x1f   : > { %1242 = vmatprep.subr.bf16.mxu0 %v1505_v0  ;;  %v1247_v20 = vpack.c.bf16 %v318_v18, %v317_v17  ;;  %v320_v24 = vld [vmem:[%s1607_s9 + $0x38] sm:$0xff]  ;;  %v1283_v25 = vpack.c.bf16 %v336_v22, %v335_v21  ;;  %v337_v27 = vld [vmem:[%s1607_s9 + $0xc0] sm:$0xff]  ;;  %v338_v28 = vld [vmem:[%s1607_s9 + $0xc8] sm:$0xff]  ;;  %v634_v17 = vlaneseq }
  0x20   : > { %v1251_v26 = vpack.c.bf16 %v320_v24, %v319_v23  ;;  %v321_v29 = vld [vmem:[%s1607_s9 + $0x40] sm:$0xff]  ;;  %v322_v30 = vld [vmem:[%s1607_s9 + $0x48] sm:$0xff]  ;;  %v1287_v31 = vpack.c.bf16 %v338_v28, %v337_v27  ;;  %v339_v33 = vld [vmem:[%s1607_s9 + $0xd0] sm:$0xff] }
  0x21   : > { %v1255_v32 = vpack.c.bf16 %v322_v30, %v321_v29  ;;  %v340_v34 = vld [vmem:[%s1607_s9 + $0xd8] sm:$0xff]  ;;  %v323_v35 = vld [vmem:[%s1607_s9 + $0x50] sm:$0xff]  ;;  %v341_v39 = vld [vmem:[%s1607_s9 + $0xe0] sm:$0xff] }
  0x22   : > { %v324_v36 = vld [vmem:[%s1607_s9 + $0x58] sm:$0xff]  ;;  %v1291_v37 = vpack.c.bf16 %v340_v34, %v339_v33  ;;  %v342_v40 = vld [vmem:[%s1607_s9 + $0xe8] sm:$0xff]  ;;  %v325_v41 = vld [vmem:[%s1607_s9 + $0x60] sm:$0xff] }
  0x23   : > { %v1259_v38 = vpack.c.bf16 %v324_v36, %v323_v35  ;;  %v326_v42 = vld [vmem:[%s1607_s9 + $0x68] sm:$0xff]  ;;  %v1295_v43 = vpack.c.bf16 %v342_v40, %v341_v39  ;;  %v343_v45 = vld [vmem:[%s1607_s9 + $0xf0] sm:$0xff]  ;;  %v344_v46 = vld [vmem:[%s1607_s9 + $0xf8] sm:$0xff] }
  0x24   : > { %v1263_v44 = vpack.c.bf16 %v326_v42, %v325_v41  ;;  %v327_v47 = vld [vmem:[%s1607_s9 + $0x70] sm:$0xff]  ;;  %v328_v48 = vld [vmem:[%s1607_s9 + $0x78] sm:$0xff]  ;;  %v1299_v49 = vpack.c.bf16 %v344_v46, %v343_v45  ;;  %v312_v51 = vld [vmem:[%s286_s13 + $0x8] sm:$0xff]  ;;  %s840_s9 = sshll.u32 %s281_s7, 4  ;;  %s1772_s9 = int_to_ptr.vmem [resolvable:$true] %s840_s9 }
  0x25   : > { %1277 = vmatpush3.bf16.xpose.msk.msra.mxu1 %vm1611_vm2, %v1275_v13  ;;  %v1267_v50 = vpack.c.bf16 %v328_v48, %v327_v47  ;;  %v311_v52 = vld [vmem:[%s286_s13] sm:$0xff]  ;;  %v380_v53 = vmul.f32 0.17677669, %v312_v51  ;;  %v362_v56 = vld [vmem:[%s1710_s16 + $0x88] sm:$0xff]  ;;  %v363_v60 = vld [vmem:[%s1710_s16 + $0x90] sm:$0xff]  ;;  %s814_s13 = scalar_lea.sflag [#allocation5], %s1763_s30 }
  0x26   : > { %1245 = vmatpush3.bf16.xpose.msk.msra.mxu0 %vm1611_vm2, %v1243_v14  ;;  %1278 = vmatprep.subr.bf16.mxu1 %v1505_v0  ;;  %v379_v54 = vmul.f32 0.17677669, %v311_v52  ;;  %v361_v55 = vld [vmem:[%s1710_s16 + $0x80] sm:$0xff]  ;;  %v346_v59 = vld [vmem:[%s1710_s16 + $0x8] sm:$0xff]  ;;  %v364_v61 = vld [vmem:[%s1710_s16 + $0x98] sm:$0xff]  ;;  %s1409_s14 = scalar_lea.vmem %s1772_s9, 256 }
  0x27   : > { %1246 = vmatprep.subr.bf16.mxu0 %v1505_v0  ;;  %v345_v57 = vld [vmem:[%s1710_s16] sm:$0xff]  ;;  %v1327_v58 = vpack.c.bf16 %v362_v56, %v361_v55  ;;  %v347_v63 = vld [vmem:[%s1710_s16 + $0x10] sm:$0xff]  ;;  %v1330_v2 = vpack.c.bf16 %v364_v61, %v363_v60  ;;  %v366_v5 = vld [vmem:[%s1710_s16 + $0xa8] sm:$0xff]  ;;  %p1410_p11 = scmp.ne.s32.totalorder %s1772_s9, %s1409_s14 }
  0x28   : > { %v1303_v62 = vpack.c.bf16 %v346_v59, %v345_v57  ;;  %v365_v4 = vld [vmem:[%s1710_s16 + $0xa0] sm:$0xff]  ;;  %v350_v7 = vld [vmem:[%s1710_s16 + $0x28] sm:$0xff]  ;;  %v367_v10 = vld [vmem:[%s1710_s16 + $0xb0] sm:$0xff] }
  0x29   : > { %v349_v6 = vld [vmem:[%s1710_s16 + $0x20] sm:$0xff]  ;;  %v1333_v8 = vpack.c.bf16 %v366_v5, %v365_v4  ;;  %v368_v11 = vld [vmem:[%s1710_s16 + $0xb8] sm:$0xff]  ;;  %v351_v30 = vld [vmem:[%s1710_s16 + $0x30] sm:$0xff]  ;;  %p1411_p12 = pnand %p1410_p11, %p1582_p5 }
  0x2a   : > { %v1309_v9 = vpack.c.bf16 %v350_v7, %v349_v6  ;;  %v1336_v12 = vpack.c.bf16 %v368_v11, %v367_v10  ;;  %v378_v13 = vld [vmem:[%s306_s26 + $0x2] sm:$0x3]  ;;  %v377_v14 = vld [vmem:[%s306_s26] sm:$0x3]  ;;  %v370_v34 = vld [vmem:[%s1710_s16 + $0xc8] sm:$0xff] }
  0x2b   : > { %vm625_vm3 = vnez %v378_v13  ;;  %vm624_vm4 = vnez %v377_v14  ;;  %v353_v36 = vld [vmem:[%s1710_s16 + $0x40] sm:$0xff]  ;;  %v372_v40 = vld [vmem:[%s1710_s16 + $0xd8] sm:$0xff]  ;;  %v355_v42 = vld [vmem:[%s1710_s16 + $0x50] sm:$0xff]  ;;  %p1412_p13 = pneg %p1411_p12 }
  0x2c   : > { %v627_v16 = vsel %vm625_vm3, 16843009, %v1508_v15  ;;  %v626_v18 = vsel %vm624_vm4, 16843009, %v1508_v15  ;;  %v374_v46 = vld [vmem:[%s1710_s16 + $0xe8] sm:$0xff]  ;;  %v357_v48 = vld [vmem:[%s1710_s16 + $0x60] sm:$0xff] }
  0x2d   : > { %1281 = vmatpush3.bf16.xpose.msk.msra.mxu1 %vm1611_vm2, %v1279_v19  ;;  %v629_v19 = vunpack.c.0.s8 %v627_v16  ;;  %v628_v21 = vunpack.c.0.s8 %v626_v18  ;;  %v376_v52 = vld [vmem:[%s1710_s16 + $0xf8] sm:$0xff] }
  0x2e   : > { %1249 = vmatpush3.bf16.xpose.msk.msra.mxu0 %vm1611_vm2, %v1247_v20  ;;  %1282 = vmatprep.subr.bf16.mxu1 %v1505_v0  ;;  %v635_v20 = vand.u32 127, %v634_v17  ;;  %v360_v55 = vld [vmem:[%s1710_s16 + $0x78] sm:$0xff] }
  0x2f   : > { %1250 = vmatprep.subr.bf16.mxu0 %v1505_v0  ;;  %vm631_vm5 = vcmp.ne.s32.totalorder %v629_v19, 0  ;;  %vm630_vm7 = vcmp.ne.s32.totalorder %v628_v21, 0 }
  0x30   : > { %vm636_vm6 = vcmp.ge.s32.totalorder %v635_v20, 8 }
  0x35   : > { %1285 = vmatpush3.bf16.xpose.msk.msra.mxu1 %vm1611_vm2, %v1283_v25 }
  0x36   : > { %1253 = vmatpush3.bf16.xpose.msk.msra.mxu0 %vm1611_vm2, %v1251_v26  ;;  %1286 = vmatprep.subr.bf16.mxu1 %v1505_v0 }
  0x37   : > { %1254 = vmatprep.subr.bf16.mxu0 %v1505_v0 }
  0x3d   : > { %1289 = vmatpush3.bf16.xpose.msk.msra.mxu1 %vm1611_vm2, %v1287_v31  ;;  %v352_v31 = vld [vmem:[%s1710_s16 + $0x38] sm:$0xff] }
  0x3e   : > { %1257 = vmatpush3.bf16.xpose.msk.msra.mxu0 %vm1611_vm2, %v1255_v32  ;;  %1290 = vmatprep.subr.bf16.mxu1 %v1505_v0  ;;  %v369_v32 = vld [vmem:[%s1710_s16 + $0xc0] sm:$0xff]  ;;  %v1312_v33 = vpack.c.bf16 %v352_v31, %v351_v30 }
  0x3f   : > { %1258 = vmatprep.subr.bf16.mxu0 %v1505_v0  ;;  %v1339_v35 = vpack.c.bf16 %v370_v34, %v369_v32 }
  0x45   : > { %1293 = vmatpush3.bf16.xpose.msk.msra.mxu1 %vm1611_vm2, %v1291_v37  ;;  %v354_v37 = vld [vmem:[%s1710_s16 + $0x48] sm:$0xff] }
  0x46   : > { %1261 = vmatpush3.bf16.xpose.msk.msra.mxu0 %vm1611_vm2, %v1259_v38  ;;  %1294 = vmatprep.subr.bf16.mxu1 %v1505_v0  ;;  %v371_v38 = vld [vmem:[%s1710_s16 + $0xd0] sm:$0xff]  ;;  %v1315_v39 = vpack.c.bf16 %v354_v37, %v353_v36 }
  0x47   : > { %1262 = vmatprep.subr.bf16.mxu0 %v1505_v0  ;;  %v1342_v41 = vpack.c.bf16 %v372_v40, %v371_v38 }
  0x4d   : > { %1297 = vmatpush3.bf16.xpose.msk.msra.mxu1 %vm1611_vm2, %v1295_v43  ;;  %v356_v43 = vld [vmem:[%s1710_s16 + $0x58] sm:$0xff] }
  0x4e   : > { %1265 = vmatpush3.bf16.xpose.msk.msra.mxu0 %vm1611_vm2, %v1263_v44  ;;  %1298 = vmatprep.subr.bf16.mxu1 %v1505_v0  ;;  %v373_v44 = vld [vmem:[%s1710_s16 + $0xe0] sm:$0xff]  ;;  %v1318_v45 = vpack.c.bf16 %v356_v43, %v355_v42 }
  0x4f   : > { %1266 = vmatprep.subr.bf16.mxu0 %v1505_v0  ;;  %v1345_v47 = vpack.c.bf16 %v374_v46, %v373_v44 }
  0x55   : > { %1301 = vmatpush3.bf16.xpose.msk.msra.mxu1 %vm1611_vm2, %v1299_v49  ;;  %v358_v49 = vld [vmem:[%s1710_s16 + $0x68] sm:$0xff] }
  0x56   : > { %1269 = vmatpush3.bf16.xpose.msk.msra.mxu0 %vm1611_vm2, %v1267_v50  ;;  %1326 = vmatprep.subr.bf16.mxu1 %v1505_v0  ;;  %v375_v50 = vld [vmem:[%s1710_s16 + $0xf0] sm:$0xff]  ;;  %v1321_v51 = vpack.c.bf16 %v358_v49, %v357_v48 }
  0x57   : > { %1302 = vmatprep.subr.bf16.mxu0 %v1505_v0 }
  0x5c   : > { %1166 = vmatmul.mubr.msk.f32.vlgmr.msra.gmra.mrb[0].mxu1 %vm381_vm1, %v380_v53  ;;  %v1348_v53 = vpack.c.bf16 %v376_v52, %v375_v50 }
  0x5d   : > { %1131 = vmatmul.mubr.msk.f32.vlgmr.msra.gmra.mrb[0].mxu0 %vm381_vm1, %v379_v54  ;;  %1235 = vmatprep.mubr.msk.f32.mxu1 %vm1506_vm0, %v1507_v1  ;;  %v359_v54 = vld [vmem:[%s1710_s16 + $0x70] sm:$0xff] }
  0x5e   : > { %1200 = vmatprep.mubr.msk.f32.mxu0 %vm1506_vm0, %v1507_v1  ;;  %v348_v1 = vld [vmem:[%s1710_s16 + $0x18] sm:$0xff]  ;;  %1328 = vmatpush3.bf16.msra.mxu1 %v1327_v58  ;;  %v1324_v56 = vpack.c.bf16 %v360_v55, %v359_v54  ;;  %s1413_s16 = sshll.u32 %s1509_s15, 4  ;;  %s1414_s16 = int_to_ptr.vmem [resolvable:$false] %s1413_s16 }
  0x5f   : > { %1329 = vmatprep.subr.bf16.mxu1 %v1505_v0  ;;  %1304 = vmatpush3.bf16.msra.mxu0 %v1303_v62  ;;  %v1306_v3 = vpack.c.bf16 %v348_v1, %v347_v63  ;;  %s1415_s17 = scalar_lea.vmem %s1414_s16, 512  ;;  %p1416_p0 = scmp.lt.s32.totalorder %s1772_s9, %s1414_s16 }
  0x60   : > { %1305 = vmatprep.subr.bf16.mxu0 %v1505_v0  ;;  %p1417_p1 = scmp.lt.s32.totalorder %s1415_s17, %s1409_s14 }
  0x62   : > { %1331 = vmatpush3.bf16.msra.mxu1 %v1330_v2  ;;  %p1418_p2 = por %p1417_p1, %p1416_p0 }
  0x63   : > { %1332 = vmatprep.subr.bf16.mxu1 %v1505_v0  ;;  %1307 = vmatpush3.bf16.msra.mxu0 %v1306_v3 }
  0x64   : > { %1308 = vmatprep.subr.bf16.mxu0 %v1505_v0  ;;  %p1419_p3 = pnand %p1418_p2, %p1412_p13 }
  0x66   : > { %1334 = vmatpush3.bf16.msra.mxu1 %v1333_v8 }
  0x67   : > { %1335 = vmatprep.subr.bf16.mxu1 %v1505_v0  ;;  %1310 = vmatpush3.bf16.msra.mxu0 %v1309_v9 }
  0x68   : > { %1311 = vmatprep.subr.bf16.mxu0 %v1505_v0 }
  0x6a   : > { %1337 = vmatpush3.bf16.msra.mxu1 %v1336_v12 }
  0x6b   : > { %1338 = vmatprep.subr.bf16.mxu1 %v1505_v0  ;;  %1313 = vmatpush3.bf16.msra.mxu0 %v1312_v33 }
  0x6c   : > { %1314 = vmatprep.subr.bf16.mxu0 %v1505_v0 }
  0x6e   : > { %1340 = vmatpush3.bf16.msra.mxu1 %v1339_v35 }
  0x6f   : > { %1341 = vmatprep.subr.bf16.mxu1 %v1505_v0  ;;  %1316 = vmatpush3.bf16.msra.mxu0 %v1315_v39 }
  0x70   : > { %1317 = vmatprep.subr.bf16.mxu0 %v1505_v0 }
  0x72   : > { %1343 = vmatpush3.bf16.msra.mxu1 %v1342_v41 }
  0x73   : > { %1344 = vmatprep.subr.bf16.mxu1 %v1505_v0  ;;  %1319 = vmatpush3.bf16.msra.mxu0 %v1318_v45 }
  0x74   : > { %1320 = vmatprep.subr.bf16.mxu0 %v1505_v0 }
  0x76   : > { %1346 = vmatpush3.bf16.msra.mxu1 %v1345_v47 }
  0x77   : > { %1347 = vmatprep.subr.bf16.mxu1 %v1505_v0  ;;  %1322 = vmatpush3.bf16.msra.mxu0 %v1321_v51 }
  0x78   : > { %1323 = vmatprep.subr.bf16.mxu0 %v1505_v0 }
  0x7a   : > { %1349 = vmatpush3.bf16.msra.mxu1 %v1348_v53 }
  0x7b   : > { %1325 = vmatpush3.bf16.msra.mxu0 %v1324_v56 }
 0x12f   : > { %v620_v22 = vpop.f32.mrb[0].mxu1 }
 0x130   : > { %v633_v23 = vsel %vm631_vm5, -1e+09, %v620_v22  ;;  %v1167_v24 = vpop.f32.mrb[1].mxu1  ;;  %v499_v25 = vpop.f32.mrb[0].mxu0 }
 0x131   : > { %v638_v26 = vsel %vm636_vm6, -3.4028235e+38, %v633_v23  ;;  %v632_v27 = vsel %vm630_vm7, -1e+09, %v499_v25  ;;  %v1132_v28 = vpop.f32.mrb[1].mxu0 }
 0x132   : > { %641 = vmax.xlane.f32.xlu0 %v638_v26  ;;  %v637_v29 = vsel %vm636_vm6, -3.4028235e+38, %v632_v27 }
 0x136   : > { %639 = vmax.xlane.f32.xlu0 %v637_v29 }
 0x1bf   : > { %v642_v57 = vpop.xlane.xlu0 %641 }
 0x1c0   : > { %v644_v58 = vsub.f32 %v638_v26, %v642_v57 }
 0x1c2   : > { %v647_v59 = vmul.f32 1.442695, %v644_v58 }
 0x1c3   : > { %v640_v60 = vpop.xlane.xlu0 %639 }
 0x1c4   : > { %1401 = vpow2.f32 %v647_v59  ;;  %v643_v61 = vsub.f32 %v637_v29, %v640_v60 }
 0x1c6   : > { %v645_v62 = vmul.f32 1.442695, %v643_v61 }
 0x1c8   : > { %1403 = vpow2.f32 %v645_v62 }
 0x1ce   : > { %v1402_v63 = vpop.eup %1401 }
 0x1cf   : > { %651 = vadd.xlane.f32.xlu1 %v1402_v63  ;;  %1236 = vmatmul.mubr.f32.vlgmr.msra.gmra.mrb[2].mxu1 %v1402_v63 }
 0x1d2   : > { %v1404_v1 = vpop.eup %1403 }
 0x1d3   : > { %649 = vadd.xlane.f32.xlu1 %v1404_v1  ;;  %1201 = vmatmul.mubr.f32.vlgmr.msra.gmra.mrb[2].mxu0 %v1404_v1 }
 0x25c   : > { %v652_v0 = vpop.xlane.xlu1 %651 }
 0x25d   : > { %1405 = vrcp.f32 %v652_v0 }
 0x260   : > { %v650_v2 = vpop.xlane.xlu1 %649 }
 0x261   : > { %1407 = vrcp.f32 %v650_v2 }
 0x267   : > { %v1406_v3 = vpop.eup %1405 }
 0x268   : > { %v798_v4 = vmul.f32 %v1406_v3, %v1402_v63 }
 0x26a   : > { %800 = vst [vmem:[%s281_s7 + $0x8] sm:$0xff] %v798_v4 }
 0x26b   : > { %v1408_v5 = vpop.eup %1407 }
 0x26c   : > { %v797_v6 = vmul.f32 %v1408_v5, %v1404_v1 }
 0x26e   : > { %799 = vst [vmem:[%s281_s7] sm:$0xff] %v797_v6 }
 0x26f   : > { %1422 = shalt.err (!%p1419_p3)
}
 0x270   : > { %s1423_s23 = scalar_lea.hbm %s1770_s12, 256  ;;  %s1427_s6 = scalar_lea.hbm %s1852_s5, 512 }
 0x271   : > { %p1424_p4 = scmp.ne.s32.totalorder %s1770_s12, %s1423_s23  ;;  %p1428_p9 = scmp.lt.u32.totalorder %s1770_s12, %s1852_s5 }
 0x272   : > { %p1429_p10 = scmp.lt.u32.totalorder %s1427_s6, %s1423_s23  ;;  %p1431_p12 = scmp.lt.u32.totalorder %s1423_s23, %s1770_s12 }
 0x273   : > { %p1425_p7 = pnand %p1424_p4, %p1582_p5 }
 0x274   : > { %p1430_p11 = por %p1429_p10, %p1428_p9 }
 0x275   : > { %p1426_p8 = pneg %p1425_p7 }
 0x276   : > { %p1432_p13 = por %p1431_p12, %p1430_p11 }
 0x278   : > { %p1433_p0 = pnand %p1432_p13, %p1426_p8 }
 0x27a   : > { %1436 = shalt.err (!%p1433_p0)
}
 0x27b   : > { %s1510_s10 = smov 128   ;;  %s1511_s11 = smov 8   ;;  %vm806_vm8 = vcmask 523520  }
 0x27c   : > { %1351 = dma.vmem_to_hbm [thread:$0]  (%p1582_p5), %s1772_s9, 256, %s1770_s12, %s814_s13, %s1510_s10, %s1510_s10, %s1511_s11  }
 0x27d   : > { %s974_s14 = sshll.u32 %s1763_s30, 3  ;;  %s1512_s15 = smov 32  }
 0x27e   : > { %s274_s16 = scalar_lea.vmem [#allocation2], %s974_s14  ;;  %s1022_s17 = sshll.u32 %s1565_s22, 7 }
 0x27f   : > { %s827_s23 = sshll.u32 %s274_s16, 4  ;;  %s1804_s9 = scalar_lea.hbm %s1851_s4, %s1022_s17  ;;  %s1806_s23 = int_to_ptr.vmem [resolvable:$true] %s827_s23 }
 0x280   : > { %s809_s12 = scalar_lea.sflag [#allocation3], %s1763_s30  ;;  %s1437_s13 = scalar_lea.vmem %s1806_s23, 128 }
 0x281   : > { %p1438_p1 = scmp.ne.s32.totalorder %s1806_s23, %s1437_s13  ;;  %s1513_s22 = smov [#allocation2]  }
 0x282   : > { %s1441_s6 = sshll.u32 %s1513_s22, 4  ;;  %s1442_s6 = int_to_ptr.vmem [resolvable:$false] %s1441_s6 }
 0x283   : > { %p1439_p2 = pnand %p1438_p1, %p1582_p5  ;;  %s1443_s7 = scalar_lea.vmem %s1442_s6, 256 }
 0x284   : > { %p1444_p4 = scmp.lt.s32.totalorder %s1806_s23, %s1442_s6  ;;  %p1445_p7 = scmp.lt.s32.totalorder %s1443_s7, %s1437_s13 }
 0x285   : > { %p1440_p3 = pneg %p1439_p2 }
 0x286   : > { %p1446_p8 = por %p1445_p7, %p1444_p4 }
 0x288   : > { %p1447_p9 = pnand %p1446_p8, %p1440_p3 }
 0x2a2   : > { %v791_v7 = vpop.f32.mrb[2].mxu1 }
 0x2a3   : > { %v796_v8 = vmul.f32 %v1406_v3, %v791_v7  ;;  %v1237_v9 = vpop.f32.mrb[3].mxu1 }
 0x2a5   : > { %803 = vrot.lane.b32.xlu0 %v796_v8, %s1512_s15 }
 0x2a6   : > { %v721_v10 = vpop.f32.mrb[2].mxu0 }
 0x2a7   : > { %v795_v11 = vmul.f32 %v1408_v5, %v721_v10  ;;  %v1202_v12 = vpop.f32.mrb[3].mxu0 }
 0x2a9   : > { %801 = vst.msk [vmem:[%s274_s16] sm:$0xff] %vm381_vm1, %v795_v11 }
 0x317   : > { %v804_v13 = vpop.permute.xlu0 %803 }
 0x318   : > { %807 = vst.msk [vmem:[%s274_s16] sm:$0xff] %vm806_vm8, %v804_v13 }
 0x319   : > { %1450 = shalt.err (!%p1447_p9)
}
 0x31a   : > { %s1451_s30 = scalar_lea.hbm %s1804_s9, 128  ;;  %s1455_s11 = scalar_lea.hbm %s1851_s4, 256 }
 0x31b   : > { %p1452_p10 = scmp.ne.s32.totalorder %s1804_s9, %s1451_s30  ;;  %p1456_p13 = scmp.lt.u32.totalorder %s1804_s9, %s1851_s4 }
 0x31c   : > { %p1457_p0 = scmp.lt.u32.totalorder %s1455_s11, %s1451_s30  ;;  %p1459_p2 = scmp.lt.u32.totalorder %s1451_s30, %s1804_s9 }
 0x31d   : > { %p1453_p11 = pnand %p1452_p10, %p1582_p5 }
 0x31e   : > { %p1458_p1 = por %p1457_p0, %p1456_p13 }
 0x31f   : > { %p1454_p12 = pneg %p1453_p11 }
 0x320   : > { %p1460_p3 = por %p1459_p2, %p1458_p1 }
 0x322   : > { %p1461_p4 = pnand %p1460_p3, %p1454_p12 }
 0x324   : > { %1464 = shalt.err (!%p1461_p4)
}
 0x325   : > { %1350 = dma.vmem_to_hbm [thread:$0]  (%p1582_p5), %s1806_s23, 128, %s1804_s9, %s809_s12  }
 0x326 PF: > { %p1361_p7 = scmp.ge.s32.totalorder %s1503_s21, 2  ;;  %s855_s16 = sand.u32 1, %s1491_s18  }
 0x327   : > { %s856_s17 = scalar_lea.sflag [#allocation3], %s855_s16 }
 0x328   : > { %p1355_p8 = pnand %p1361_p7, %p1586_p6 }
 0x32a   : > { %1482 = dma.done.wait (!%p1355_p8), %s856_s17, 128  }
 0x32b   : > { %1484 = vsyncadd (!%p1355_p8), %s856_s17, 4294967168  ;;  %s865_s25 = scalar_lea.sflag [#allocation5], %s855_s16 }
 0x32c   : > { %1486 = dma.done.wait (!%p1355_p8), %s865_s25, 256  }
 0x32d   : > { %1488 = vsyncadd (!%p1355_p8), %s865_s25, 4294967040  ;;  %p19_p5 = scmp.ge.s32.totalorder %s1569_s24, 4   ;;  %s1857_s18 = smov %s1495_s19 }
 0x32e   : > { %s1858_s19 = smov %s1499_s20  ;;  %s1859_s20 = smov %s1580_s27 }
 0x32f   : > { %s1860_s21 = smov %s1569_s24  ;;  %21 = sbr.rel (!%p19_p5) target bundleno = 5 (0x5), region = 97 }
 0x336   :  { %870 = vsyncpa [#allocation3], 1 }
 0x337   :  { %872 = vsyncpa [#allocation3 + $0x1], 1 }
 0x338   :  { %873 = vsyncpa [#allocation5], 1 }
 0x339   :  { %875 = vsyncpa [#allocation5 + $0x1], 1 }

</bundles_post_ra>
